<compile_context>
chip_gen: v5e
topology: v5e:2x2
jax: 0.10.0
libtpu: 0.0.40
codegen_flags: <defaults>
</compile_context>

<pallas_src>
import jax
import jax.numpy as jnp
from jax.experimental import pallas as pl
from jax.experimental.pallas import tpu as pltpu

IN_DIM = 784
HID_DIM = 256


def _discriminator_kernel(x_ref, w1_ref, b1_ref, w2_ref, b2_ref, o_ref):
    # In-kernel f32 -> bf16 cast: saves a full wrapper-side HBM pass over x;
    # the cast is a VPU op that hides under the MXU / DMA critical path.
    x_bf16 = x_ref[...].astype(jnp.bfloat16)
    # Layer 1 on the MXU: bf16 operands, f32 accumulation.
    h = jnp.dot(x_bf16, w1_ref[...], preferred_element_type=jnp.float32)
    h = h + b1_ref[...]                              # (tb, 256) + (1, 256)
    # LeakyReLU(0.2): single VPU max (== where(h>0, h, 0.2*h) for slope in (0,1)).
    h = jnp.maximum(h, 0.2 * h)
    # Layer 2 (out features = 1): VPU multiply + lane reduction instead of a
    # wasteful N=1 MXU matmul; b2 is a scalar read from SMEM.
    z = jnp.sum(h * w2_ref[...], axis=-1, keepdims=True) + b2_ref[0, 0]
    # Exact sigmoid (EUP exp + exact divide) -> output strictly inside (0, 1).
    o_ref[...] = 1.0 / (1.0 + jnp.exp(-z))


def discriminator_forward(x, w1, b1, w2, b2, *, tile_b=1024):
    """x: (B, 784) f32 -> (B, 1) f32. Weights stored as (in, out)."""
    B = x.shape[0]

    # Sublane-align the batch. Only non-multiple-of-8 batches pay a (tiny) pad;
    # typical power-of-two GAN batches skip this and x reaches the kernel
    # untouched (no wrapper cast, no full-array copy).
    b_aligned = ((B + 7) // 8) * 8
    if b_aligned != B:
        x = jnp.pad(x, ((0, b_aligned - B), (0, 0)))

    # Batch tile: multiple of 8, at most tile_b. Force >= 2 grid steps whenever
    # possible so v7x's two TensorCores both get work on the "parallel" axis;
    # ragged final tiles are handled by Pallas edge-block clipping.
    # (tile_b=2048 is fine on v6e/v7x for very large batches; 512 on a tight
    #  v5e config — 1024 is a safe default for all generations.)
    tb = max(8, min(tile_b, b_aligned))
    if pl.cdiv(b_aligned, tb) < 2 and b_aligned >= 16:
        tb = ((b_aligned + 15) // 16) * 8        # ~half the batch, 8-aligned
    grid = (pl.cdiv(b_aligned, tb),)

    # Weights are tiny (~0.4 MB) -> cast once in the wrapper; constant
    # index_maps keep them VMEM-resident across the whole grid.
    w1_bf16 = w1.astype(jnp.bfloat16)
    b1_row = b1.reshape(1, HID_DIM).astype(jnp.float32)
    w2_row = w2.reshape(1, HID_DIM).astype(jnp.float32)   # (256,1) -> (1,256)
    b2_sc = b2.reshape(1, 1).astype(jnp.float32)

    cost = pl.CostEstimate(
        flops=2 * b_aligned * IN_DIM * HID_DIM + 2 * b_aligned * HID_DIM,
        transcendentals=b_aligned,
        bytes_accessed=(b_aligned * IN_DIM * 4         # x (f32, dominant stream)
                        + IN_DIM * HID_DIM * 2         # w1 (bf16)
                        + HID_DIM * 4 * 2 + 4          # b1, w2 row, b2
                        + b_aligned * 4),              # output
    )

    out = pl.pallas_call(
        _discriminator_kernel,
        out_shape=jax.ShapeDtypeStruct((b_aligned, 1), jnp.float32),
        grid=grid,
        in_specs=[
            pl.BlockSpec((tb, IN_DIM), lambda i: (i, 0)),        # x tile (f32)
            pl.BlockSpec((IN_DIM, HID_DIM), lambda i: (0, 0)),   # w1 (resident)
            pl.BlockSpec((1, HID_DIM), lambda i: (0, 0)),        # b1 (resident)
            pl.BlockSpec((1, HID_DIM), lambda i: (0, 0)),        # w2 row
            pl.BlockSpec((1, 1), lambda i: (0, 0),
                         memory_space=pltpu.MemorySpace.SMEM),   # b2 scalar
        ],
        # Note: a lane-dense (1, tb) output layout would reclaim ~1 MB of VMEM
        # but requires a (tb,1)->(1,tb) transpose in-kernel; per review the
        # output stream is tiny, so the (tb, 1) block is kept.
        out_specs=pl.BlockSpec((tb, 1), lambda i: (i, 0)),
        compiler_params=pltpu.CompilerParams(
            dimension_semantics=("parallel",),
            # f32 x tiles (3.2 MB double-buffered @ tb=1024) + resident weights
            # + padded output buffers: give headroom vs v5e's 16 MiB default
            # scoped VMEM; 32 MiB is within physical VMEM on every generation.
            vmem_limit_bytes=32 * 1024 * 1024,
        ),
        cost_estimate=cost,
    )(x, w1_bf16, b1_row, w2_row, b2_sc)

    return out[:B]


def init_params(key):
    """Deterministic init matching nn.Linear shapes (stored as (in, out))."""
    k1, k2, k3, k4 = jax.random.split(key, 4)
    lim1 = 1.0 / jnp.sqrt(IN_DIM)
    lim2 = 1.0 / jnp.sqrt(HID_DIM)
    w1 = jax.random.uniform(k1, (IN_DIM, HID_DIM), jnp.float32, -lim1, lim1)
    b1 = jax.random.uniform(k2, (HID_DIM,), jnp.float32, -lim1, lim1)
    w2 = jax.random.uniform(k3, (HID_DIM, 1), jnp.float32, -lim2, lim2)
    b2 = jax.random.uniform(k4, (1,), jnp.float32, -lim2, lim2)
    return w1, b1, w2, b2


def reference_forward(x, w1, b1, w2, b2):
    h = x @ w1 + b1
    h = jnp.where(h > 0, h, 0.2 * h)
    z = h @ w2 + b2
    return jax.nn.sigmoid(z)


if __name__ == "__main__":
    key = jax.random.PRNGKey(0)
    kx, kp = jax.random.split(key)

    B = 10  # deliberately not a multiple of 8 to exercise the aligned-pad path
    x = jax.random.normal(kx, (B, IN_DIM), jnp.float32)
    w1, b1, w2, b2 = init_params(kp)

    out = discriminator_forward(x, w1, b1, w2, b2)
    out = jax.block_until_ready(out)

    ref = reference_forward(x, w1, b1, w2, b2)
    assert out.shape == (B, 1), out.shape
    # bf16 matmul inputs (f32 accumulation) -> loosened tolerance vs f32 ref.
    assert jnp.allclose(out, ref, atol=2e-2, rtol=2e-2), "mismatch vs reference"

    print("KERNEL_OK")
</pallas_src>

<mosaic_0001>
module attributes {stable_mosaic.version = 11 : i64} {
  func.func @_discriminator_kernel(%arg0: i32, %arg1: memref<8x784xf32, #tpu.memory_space<vmem>>, %arg2: memref<784x256xbf16, #tpu.memory_space<vmem>>, %arg3: memref<1x256xf32, #tpu.memory_space<vmem>>, %arg4: memref<1x256xf32, #tpu.memory_space<vmem>>, %arg5: memref<1x1xf32, #tpu.memory_space<smem>>, %arg6: memref<8x1xf32, #tpu.memory_space<vmem>>) attributes {dimension_semantics = [#tpu.dimension_semantics<parallel>], iteration_bounds = array<i64: 2>, scalar_prefetch = 0 : i64, scratch_operands = 0 : i64, tpu.core_type = #tpu.core_type<tc>, window_params = [{transform_indices = @transform_0, window_bounds = array<i64: 8, 784>}, {pipeline_mode = #tpu.pipeline_mode<synchronous>, transform_indices = @transform_1, window_bounds = array<i64: 784, 256>}, {pipeline_mode = #tpu.pipeline_mode<synchronous>, transform_indices = @transform_2, window_bounds = array<i64: 1, 256>}, {pipeline_mode = #tpu.pipeline_mode<synchronous>, transform_indices = @transform_3, window_bounds = array<i64: 1, 256>}, {transform_indices = @transform_4, window_bounds = array<i64: 1, 1>}, {transform_indices = @transform_5, window_bounds = array<i64: 8, 1>}]} {
    %c0 = arith.constant 0 : index
    %c0_0 = arith.constant 0 : index
    %0 = vector.load %arg1[%c0, %c0_0] : memref<8x784xf32, #tpu.memory_space<vmem>>, vector<8x784xf32>
    %1 = arith.truncf %0 : vector<8x784xf32> to vector<8x784xbf16>
    %c0_1 = arith.constant 0 : index
    %c0_2 = arith.constant 0 : index
    %2 = vector.load %arg2[%c0_1, %c0_2] : memref<784x256xbf16, #tpu.memory_space<vmem>>, vector<784x256xbf16>
    %cst = arith.constant dense<0.000000e+00> : vector<8x256xf32>
    %3 = tpu.matmul %1, %2, %cst {dimension_numbers = #tpu.dot_dimension_numbers<[1], [0], [0], [1], [0, 0, 1, 1], [], []>} : vector<8x784xbf16>, vector<784x256xbf16>, vector<8x256xf32> -> vector<8x256xf32>
    %c0_3 = arith.constant 0 : index
    %c0_4 = arith.constant 0 : index
    %4 = vector.load %arg3[%c0_3, %c0_4] : memref<1x256xf32, #tpu.memory_space<vmem>>, vector<1x256xf32>
    %5 = vector.broadcast %4 : vector<1x256xf32> to vector<8x256xf32>
    %6 = arith.addf %3, %5 : vector<8x256xf32>
    %cst_5 = arith.constant 2.000000e-01 : f32
    %7 = vector.broadcast %cst_5 : f32 to vector<8x256xf32>
    %8 = arith.mulf %7, %6 : vector<8x256xf32>
    %9 = arith.maximumf %6, %8 : vector<8x256xf32>
    %c0_6 = arith.constant 0 : index
    %c0_7 = arith.constant 0 : index
    %10 = vector.load %arg4[%c0_6, %c0_7] : memref<1x256xf32, #tpu.memory_space<vmem>>, vector<1x256xf32>
    %11 = vector.broadcast %10 : vector<1x256xf32> to vector<8x256xf32>
    %12 = arith.mulf %9, %11 : vector<8x256xf32>
    %cst_8 = arith.constant dense<0.000000e+00> : vector<8xf32>
    %13 = vector.multi_reduction <add>, %12, %cst_8 [1] : vector<8x256xf32> to vector<8xf32>
    %14 = vector.shape_cast %13 : vector<8xf32> to vector<8x1xf32>
    %c0_9 = arith.constant 0 : index
    %c0_10 = arith.constant 0 : index
    %15 = memref.load %arg5[%c0_9, %c0_10] : memref<1x1xf32, #tpu.memory_space<smem>>
    %16 = vector.broadcast %15 : f32 to vector<8x1xf32>
    %17 = arith.addf %14, %16 : vector<8x1xf32>
    %cst_11 = arith.constant 0.000000e+00 : f32
    %18 = vector.broadcast %cst_11 : f32 to vector<8x1xf32>
    %19 = arith.subf %18, %17 : vector<8x1xf32>
    %20 = math.exp %19 : vector<8x1xf32>
    %cst_12 = arith.constant 1.000000e+00 : f32
    %21 = vector.broadcast %cst_12 : f32 to vector<8x1xf32>
    %22 = arith.addf %21, %20 : vector<8x1xf32>
    %cst_13 = arith.constant 1.000000e+00 : f32
    %23 = vector.broadcast %cst_13 : f32 to vector<8x1xf32>
    %24 = arith.divf %23, %22 : vector<8x1xf32>
    %c0_14 = arith.constant 0 : index
    %c0_15 = arith.constant 0 : index
    %25 = vector.load %arg6[%c0_14, %c0_15] : memref<8x1xf32, #tpu.memory_space<vmem>>, vector<8x1xf32>
    tpu.vector_store %arg6[%c0_14, %c0_15], %24 {strides = array<i32>} : memref<8x1xf32, #tpu.memory_space<vmem>>, vector<8x1xf32>,
    return
  }
  func.func @transform_0(%arg0: i32) -> (i32, i32) {
    %c0_i32 = arith.constant 0 : i32
    %c0_i32_0 = arith.constant 0 : i32
    return %arg0, %c0_i32 : i32, i32
  }
  func.func @transform_1(%arg0: i32) -> (i32, i32) {
    %c0_i32 = arith.constant 0 : i32
    %c0_i32_0 = arith.constant 0 : i32
    %c0_i32_1 = arith.constant 0 : i32
    return %c0_i32, %c0_i32_0 : i32, i32
  }
  func.func @transform_2(%arg0: i32) -> (i32, i32) {
    %c0_i32 = arith.constant 0 : i32
    %c0_i32_0 = arith.constant 0 : i32
    %c0_i32_1 = arith.constant 0 : i32
    return %c0_i32, %c0_i32_0 : i32, i32
  }
  func.func @transform_3(%arg0: i32) -> (i32, i32) {
    %c0_i32 = arith.constant 0 : i32
    %c0_i32_0 = arith.constant 0 : i32
    %c0_i32_1 = arith.constant 0 : i32
    return %c0_i32, %c0_i32_0 : i32, i32
  }
  func.func @transform_4(%arg0: i32) -> (i32, i32) {
    %c0_i32 = arith.constant 0 : i32
    %c0_i32_0 = arith.constant 0 : i32
    %c0_i32_1 = arith.constant 0 : i32
    return %c0_i32, %c0_i32_0 : i32, i32
  }
  func.func @transform_5(%arg0: i32) -> (i32, i32) {
    %c0_i32 = arith.constant 0 : i32
    %c0_i32_0 = arith.constant 0 : i32
    return %arg0, %c0_i32 : i32, i32
  }
}

</mosaic_0001>

<bundles_post_ra>
// kernel: tpu_custom_call.1
= control target key start
LH: loop header
LB: loop body
LE: loop exit
PB: predicated region body
PF: predicated region fallthrough
CT: control target
= control target key end

     0   :  { %s2015_s0 = inlined_call_operand.hbm [shape: f32[16,784], index: 0, kind: input, shape index: {}]   ;;  %s2016_s1 = inlined_call_operand.hbm [shape: bf16[784,256], index: 1, kind: input, shape index: {}]   ;;  %s2017_s2 = inlined_call_operand.vmem [shape: f32[1,256], index: 2, kind: input, shape index: {}]   ;;  %s2018_s3 = inlined_call_operand.vmem [shape: f32[1,256], index: 3, kind: input, shape index: {}]   ;;  %s2019_s4 = inlined_call_operand.<no memory space> [shape: f32[1,1], index: 4, kind: input, shape index: {}]   ;;  %s2020_s5 = inlined_call_operand.vmem [shape: f32[16,1], index: 5, kind: output, shape index: {}]  }
   0x1   :  { %10 = sst [smem:[#allocation2]] %s2019_s4 }
   0x2   :  { %11 = vsyncpa [#allocation4], 0 }
   0x3   :  { %13 = vsyncpa [#allocation4 + $0x1], 0 }
   0x4   :  { %14 = vsyncpa [#allocation6], 0  ;;  %s1867_s20 = smov 0   ;;  %s1869_s21 = smov 0  }
   0x5   :  { %s1871_s22 = smov 0   ;;  %s1873_s23 = smov 0  }
   0x6 LB: > { %s172_s25 = sshll.u32 %s2016_s1, 4  ;;  %s1889_s26 = sadd.s32 4294967295, %s1829_s23   ;;  %s1829_s23 = sphi %s1873_s23, %s2027_s23   ;;  %s1825_s22 = sphi %s1871_s22, %s2026_s22   ;;  %s1821_s21 = sphi %s1869_s21, %s2025_s21   ;;  %s1817_s20 = sphi %s1867_s20, %s2024_s20   ;;  %s173_s25 = int_to_ptr.hbm [resolvable:$true] %s172_s25 }
   0x7   : > { %p1171_p0 = scmp.ge.s32.totalorder %s1829_s23, 1  ;;  %p41_p1 = scmp.eq.s32.totalorder %s1889_s26, 0 }
   0x8   : > { %p161_p2 = scmp.lt.s32.totalorder %s1829_s23, 3  ;;  %s1831_s28 = smov [#allocation5]  }
   0x9   : > { %s174_s29 = sshll.u32 %s1831_s28, 4  ;;  %s1832_s30 = smov 128   ;;  %s175_s29 = int_to_ptr.vmem [resolvable:$true] %s174_s29 }
   0xa   : > { %p1894_p3 = pnand %p1171_p0, %p161_p2  ;;  %s1833_s6 = smov 8  }
   0xb   : > { %s1903_s7 = sadd.s32 1, %s1829_s23   ;;  %s27_s9 = sadd.s32 1, %s1825_s22 }
   0xc   : > { %p1681_p4 = pneg %p1894_p3  ;;  %s24_s8 = ssub.s32 %s1829_s23, %s1903_s7 }
   0xd   : > { %p25_p6 = scmp.eq.s32.totalorder %s24_s8, 0  ;;  %p34_p7 = scmp.ne.s32.totalorder %s1825_s22, %s1821_s21 }
   0xe   : > { %p1682_p5 = pnand %p1681_p4, %p41_p1  ;;  %p35_p8 = scmp.eq.s32.totalorder %s1829_s23, 0 }
   0xf   : > { %p40_p9 = scmp.ne.s32.totalorder %s1821_s21, %s1817_s20  ;;  %p1690_p12 = scmp.lt.s32.totalorder %s1829_s23, 2 }
  0x10   : > { %1684 = dma.hbm_to_vmem [thread:$0]  (!%p1682_p5), %s173_s25, 12544, %s175_s29, [#allocation6], %s1832_s30, %s1832_s30, %s1833_s6  }
  0x11   : > { %s1913_s10 = scalar_select %p25_p6, %s1825_s22, %s27_s9  }
  0x12   : > { %p36_p10 = por %p35_p8, %p34_p7  ;;  %p1917_p11 = por %p41_p1, %p40_p9 }
  0x13   : > { %s197_s12 = sand.u32 1, %s1825_s22   ;;  %s1673_s14 = smul.u32 56, %s1829_s23 }
  0x14   : > { %s1672_s13 = smul.u32 56, %s197_s12  ;;  %p1924_p13 = pnand %p1690_p12, %p36_p10 }
  0x15   : > { %s206_s18 = scalar_lea.hbm %s2015_s0, %s1673_s14  ;;  %s198_s24 = scalar_lea.sflag [#allocation4], %s197_s12 }
  0x16   : > { %s201_s19 = scalar_lea.vmem [#allocation3], %s1672_s13  ;;  %s208_s4 = sshll.u32 %s206_s18, 4  ;;  %s209_s4 = int_to_ptr.hbm [resolvable:$true] %s208_s4 }
  0x17   : > { %s210_s20 = sshll.u32 %s201_s19, 4  ;;  %s1761_s25 = sshra.s32 %s209_s4, 4  ;;  %s211_s20 = int_to_ptr.vmem [resolvable:$true] %s210_s20  ;;  %s1762_s25 = int_to_ptr.hbm [resolvable:$true] %s1761_s25 }
  0x18   : > { %s1763_s28 = scalar_lea.hbm %s1762_s25, 56  ;;  %p1765_p2 = pneg %p1924_p13 }
  0x19   : > { %p1764_p0 = scmp.ne.s32.totalorder %s1762_s25, %s1763_s28  ;;  %s1768_s30 = scalar_lea.hbm %s2015_s0, 112 }
  0x1a   : > { %p1769_p6 = scmp.lt.s32.totalorder %s1762_s25, %s2015_s0  ;;  %p1770_p7 = scmp.lt.s32.totalorder %s1768_s30, %s1763_s28 }
  0x1b   : > { %p1766_p4 = pnand %p1765_p2, %p1764_p0 }
  0x1c   : > { %p1771_p8 = por %p1770_p7, %p1769_p6 }
  0x1d   : > { %p1767_p5 = pneg %p1766_p4 }
  0x1f   : > { %p1772_p9 = pnand %p1771_p8, %p1767_p5 }
  0x21   : > { %1775 = shalt.err (!%p1772_p9)
}
  0x22   : > { %1688 = dma.hbm_to_vmem [thread:$0]  (!%p1924_p13), %s209_s4, 896, %s211_s20, %s198_s24  }
  0x23   : > { %219 = sbr.rel (%p1894_p3) target bundleno = 442 (0x1ba), region = 40  ;;  %s221_s9 = sand.u32 (!%p1894_p3), 1, %s1821_s21  }
  0x24   : > { %s1674_s12 = smul.u32 (!%p1894_p3), 56, %s221_s9  ;;  %s222_s13 = scalar_lea.sflag (!%p1894_p3), [#allocation4], %s221_s9 }
  0x26   : > { %s1944_s14 = scalar_lea.vmem (!%p1894_p3), [#allocation3], %s1674_s12 }
  0x28   : > { %1808 = dma.done.wait (%p1917_p11), %s222_s13, 896  }
  0x29   : > { %1810 = vsyncadd (%p1917_p11), %s222_s13, 4294966400 }
  0x2a   : > { %1812 = dma.done.wait (%p41_p1), [#allocation6], 12544  }
  0x2b   : > { %1814 = vsyncadd (%p41_p1), [#allocation6], 4294954752  ;;  %v1236_v0 = vld [vmem:[#allocation5 + $0x70] sm:$0xf]  ;;  %v1589_v1 = vld [vmem:[#allocation5 + $0x74] sm:$0xf0] }
  0x2c   : > { %v1364_v2 = vld [vmem:[#allocation5 + $0x170] sm:$0xf]  ;;  %v1237_v3 = vor.u32 %v1589_v1, %v1236_v0  ;;  %v1621_v4 = vld [vmem:[#allocation5 + $0x174] sm:$0xf0]  ;;  %v1228_v11 = vld [vmem:[#allocation5 + $0x60] sm:$0xf] }
  0x2d   : > { %v1428_v5 = vld [vmem:[#allocation5 + $0x1f0] sm:$0xf]  ;;  %v1637_v6 = vld [vmem:[#allocation5 + $0x1f4] sm:$0xf0]  ;;  %v1365_v7 = vor.u32 %v1621_v4, %v1364_v2  ;;  %v1587_v13 = vld [vmem:[#allocation5 + $0x64] sm:$0xf0] }
  0x2e   : > { %v1429_v8 = vor.u32 %v1637_v6, %v1428_v5  ;;  %v1300_v9 = vld [vmem:[#allocation5 + $0xf0] sm:$0xf]  ;;  %v1605_v10 = vld [vmem:[#allocation5 + $0xf4] sm:$0xf0]  ;;  %874 = vmatpush.bf16.msra.mxu0 %v1237_v3  ;;  %v1356_v14 = vld [vmem:[#allocation5 + $0x160] sm:$0xf]  ;;  %v1229_v16 = vor.u32 %v1587_v13, %v1228_v11 }
  0x2f   : > { %v1301_v12 = vor.u32 %v1605_v10, %v1300_v9  ;;  %v1619_v15 = vld [vmem:[#allocation5 + $0x164] sm:$0xf0]  ;;  %900 = vmatpush.bf16.msra.mxu2 %v1365_v7  ;;  %v1420_v18 = vld [vmem:[#allocation5 + $0x1e0] sm:$0xf]  ;;  %v1220_v23 = vld [vmem:[#allocation5 + $0x50] sm:$0xf] }
  0x30   : > { %913 = vmatpush.bf16.msra.mxu3 %v1429_v8  ;;  %v1357_v17 = vor.u32 %v1619_v15, %v1356_v14  ;;  %v1635_v19 = vld [vmem:[#allocation5 + $0x1e4] sm:$0xf0]  ;;  %v1292_v20 = vld [vmem:[#allocation5 + $0xe0] sm:$0xf]  ;;  %v1585_v24 = vld [vmem:[#allocation5 + $0x54] sm:$0xf0] }
  0x31   : > { %887 = vmatpush.bf16.msra.mxu1 %v1301_v12  ;;  %v1421_v21 = vor.u32 %v1635_v19, %v1420_v18  ;;  %v1603_v22 = vld [vmem:[#allocation5 + $0xe4] sm:$0xf0]  ;;  %v1348_v26 = vld [vmem:[#allocation5 + $0x150] sm:$0xf]  ;;  %v1617_v27 = vld [vmem:[#allocation5 + $0x154] sm:$0xf0]  ;;  %v1221_v29 = vor.u32 %v1585_v24, %v1220_v23 }
  0x32   : > { %v1293_v25 = vor.u32 %v1603_v22, %v1292_v20  ;;  %v1412_v28 = vld [vmem:[#allocation5 + $0x1d0] sm:$0xf]  ;;  %875 = vmatpush.bf16.msra.mxu0 %v1229_v16  ;;  %v1633_v30 = vld [vmem:[#allocation5 + $0x1d4] sm:$0xf0]  ;;  %v1349_v33 = vor.u32 %v1617_v27, %v1348_v26  ;;  %v1212_v35 = vld [vmem:[#allocation5 + $0x40] sm:$0xf] }
  0x33   : > { %v1284_v31 = vld [vmem:[#allocation5 + $0xd0] sm:$0xf]  ;;  %v1601_v32 = vld [vmem:[#allocation5 + $0xd4] sm:$0xf0]  ;;  %901 = vmatpush.bf16.msra.mxu2 %v1357_v17  ;;  %v1413_v34 = vor.u32 %v1633_v30, %v1412_v28  ;;  %v1583_v36 = vld [vmem:[#allocation5 + $0x44] sm:$0xf0] }
  0x34   : > { %914 = vmatpush.bf16.msra.mxu3 %v1421_v21  ;;  %v1340_v37 = vld [vmem:[#allocation5 + $0x140] sm:$0xf]  ;;  %v1285_v38 = vor.u32 %v1601_v32, %v1284_v31  ;;  %v1615_v39 = vld [vmem:[#allocation5 + $0x144] sm:$0xf0]  ;;  %v1213_v44 = vor.u32 %v1583_v36, %v1212_v35  ;;  %v1204_v47 = vld [vmem:[#allocation5 + $0x30] sm:$0xf] }
  0x35   : > { %888 = vmatpush.bf16.msra.mxu1 %v1293_v25  ;;  %v1404_v40 = vld [vmem:[#allocation5 + $0x1c0] sm:$0xf]  ;;  %v1631_v41 = vld [vmem:[#allocation5 + $0x1c4] sm:$0xf0]  ;;  %v1341_v45 = vor.u32 %v1615_v39, %v1340_v37  ;;  %v1581_v48 = vld [vmem:[#allocation5 + $0x34] sm:$0xf0] }
  0x36   : > { %v1276_v42 = vld [vmem:[#allocation5 + $0xc0] sm:$0xf]  ;;  %v1599_v43 = vld [vmem:[#allocation5 + $0xc4] sm:$0xf0]  ;;  %876 = vmatpush.bf16.msra.mxu0 %v1221_v29  ;;  %v1405_v46 = vor.u32 %v1631_v41, %v1404_v40  ;;  %v1332_v49 = vld [vmem:[#allocation5 + $0x130] sm:$0xf]  ;;  %v1205_v56 = vor.u32 %v1581_v48, %v1204_v47 }
  0x37   : > { %902 = vmatpush.bf16.msra.mxu2 %v1349_v33  ;;  %v1277_v50 = vor.u32 %v1599_v43, %v1276_v42  ;;  %v1613_v51 = vld [vmem:[#allocation5 + $0x134] sm:$0xf0]  ;;  %v1396_v52 = vld [vmem:[#allocation5 + $0x1b0] sm:$0xf]  ;;  %v1196_v59 = vld [vmem:[#allocation5 + $0x20] sm:$0xf] }
  0x38   : > { %915 = vmatpush.bf16.msra.mxu3 %v1413_v34  ;;  %v1629_v53 = vld [vmem:[#allocation5 + $0x1b4] sm:$0xf0]  ;;  %v1268_v54 = vld [vmem:[#allocation5 + $0xb0] sm:$0xf]  ;;  %v1333_v57 = vor.u32 %v1613_v51, %v1332_v49  ;;  %v1579_v60 = vld [vmem:[#allocation5 + $0x24] sm:$0xf0] }
  0x39   : > { %889 = vmatpush.bf16.msra.mxu1 %v1285_v38  ;;  %v1597_v55 = vld [vmem:[#allocation5 + $0xb4] sm:$0xf0]  ;;  %v1397_v58 = vor.u32 %v1629_v53, %v1396_v52  ;;  %v1324_v61 = vld [vmem:[#allocation5 + $0x120] sm:$0xf]  ;;  %v1611_v63 = vld [vmem:[#allocation5 + $0x124] sm:$0xf0]  ;;  %v1197_v4 = vor.u32 %v1579_v60, %v1196_v59 }
  0x3a   : > { %877 = vmatpush.bf16.msra.mxu0 %v1213_v44  ;;  %v1269_v62 = vor.u32 %v1597_v55, %v1268_v54  ;;  %v1388_v0 = vld [vmem:[#allocation5 + $0x1a0] sm:$0xf]  ;;  %v1627_v1 = vld [vmem:[#allocation5 + $0x1a4] sm:$0xf0]  ;;  %v1325_v5 = vor.u32 %v1611_v63, %v1324_v61  ;;  %v1188_v7 = vld [vmem:[#allocation5 + $0x10] sm:$0xf] }
  0x3b   : > { %903 = vmatpush.bf16.msra.mxu2 %v1341_v45  ;;  %v1260_v2 = vld [vmem:[#allocation5 + $0xa0] sm:$0xf]  ;;  %v1595_v3 = vld [vmem:[#allocation5 + $0xa4] sm:$0xf0]  ;;  %v1389_v6 = vor.u32 %v1627_v1, %v1388_v0  ;;  %v1577_v8 = vld [vmem:[#allocation5 + $0x14] sm:$0xf0] }
  0x3c   : > { %916 = vmatpush.bf16.msra.mxu3 %v1405_v46  ;;  %v1316_v9 = vld [vmem:[#allocation5 + $0x110] sm:$0xf]  ;;  %v1261_v10 = vor.u32 %v1595_v3, %v1260_v2  ;;  %v1609_v11 = vld [vmem:[#allocation5 + $0x114] sm:$0xf0]  ;;  %v1189_v16 = vor.u32 %v1577_v8, %v1188_v7  ;;  %v1180_v17 = vld [vmem:[#allocation5] sm:$0xf] }
  0x3d   : > { %890 = vmatpush.bf16.msra.mxu1 %v1277_v50  ;;  %v1380_v12 = vld [vmem:[#allocation5 + $0x190] sm:$0xf]  ;;  %v1625_v13 = vld [vmem:[#allocation5 + $0x194] sm:$0xf0]  ;;  %v1575_v18 = vld [vmem:[#allocation5 + $0x4] sm:$0xf0]  ;;  %v1317_v20 = vor.u32 %v1609_v11, %v1316_v9 }
  0x3e   : > { %878 = vmatpush.bf16.msra.mxu0 %v1205_v56  ;;  %v1252_v14 = vld [vmem:[#allocation5 + $0x90] sm:$0xf]  ;;  %v1593_v15 = vld [vmem:[#allocation5 + $0x94] sm:$0xf0]  ;;  %v1308_v19 = vld [vmem:[#allocation5 + $0x100] sm:$0xf]  ;;  %v1381_v21 = vor.u32 %v1625_v13, %v1380_v12  ;;  %v1181_v32 = vor.u32 %v1575_v18, %v1180_v17 }
  0x3f   : > { %904 = vmatpush.bf16.msra.mxu2 %v1333_v57  ;;  %v1607_v22 = vld [vmem:[#allocation5 + $0x104] sm:$0xf0]  ;;  %v1372_v23 = vld [vmem:[#allocation5 + $0x180] sm:$0xf]  ;;  %v1253_v25 = vor.u32 %v1593_v15, %v1252_v14  ;;  %v1492_v26 = vld [vmem:[#allocation5 + $0x270] sm:$0xf] }
  0x40   : > { %917 = vmatpush.bf16.msra.mxu3 %v1397_v58  ;;  %v1623_v24 = vld [vmem:[#allocation5 + $0x184] sm:$0xf0]  ;;  %v1653_v27 = vld [vmem:[#allocation5 + $0x274] sm:$0xf0]  ;;  %v1588_v28 = vld [vmem:[#allocation5 + $0x74] sm:$0xf]  ;;  %v1309_v36 = vor.u32 %v1607_v22, %v1308_v19 }
  0x41   : > { %891 = vmatpush.bf16.msra.mxu1 %v1269_v62  ;;  %v1238_v29 = vld [vmem:[#allocation5 + $0x78] sm:$0xf0]  ;;  %v1244_v30 = vld [vmem:[#allocation5 + $0x80] sm:$0xf]  ;;  %v1591_v31 = vld [vmem:[#allocation5 + $0x84] sm:$0xf0]  ;;  %v1373_v37 = vor.u32 %v1623_v24, %v1372_v23  ;;  %v1493_v41 = vor.u32 %v1653_v27, %v1492_v26 }
  0x42   : > { %879 = vmatpush.bf16.msra.mxu0 %v1197_v4  ;;  %v264_v33 = vld [vmem:[%s1944_s14 + $0x10] sm:$0xff]  ;;  %v1671_v35 = vld [vmem:[#allocation5 + $0x304] sm:$0xf0]  ;;  %v1556_v38 = vld [vmem:[#allocation5 + $0x2f0] sm:$0xf]  ;;  %v1241_v42 = vor.u32 %v1588_v28, %v1238_v29  ;;  %v1245_v46 = vor.u32 %v1591_v31, %v1244_v30  ;;  %vm870_vm0 = vcmask 130048  }
  0x43   : > { %905 = vmatpush.bf16.msra.mxu2 %v1325_v5  ;;  %v1564_v34 = vld [vmem:[#allocation5 + $0x300] sm:$0xf]  ;;  %v1669_v39 = vld [vmem:[#allocation5 + $0x2f4] sm:$0xf0]  ;;  %v1604_v40 = vld [vmem:[#allocation5 + $0xf4] sm:$0xf]  ;;  %v1956_v51 = vpack.c.bf16 %v264_v33, %v264_v33 }
  0x44   : > { %918 = vmatpush.bf16.msra.mxu3 %v1389_v6  ;;  %v1302_v43 = vld [vmem:[#allocation5 + $0xf8] sm:$0xf0]  ;;  %v1484_v44 = vld [vmem:[#allocation5 + $0x260] sm:$0xf]  ;;  %v262_v45 = vld [vmem:[%s1944_s14] sm:$0xff]  ;;  %v1565_v47 = vor.u32 %v1671_v35, %v1564_v34  ;;  %v1557_v52 = vor.u32 %v1669_v39, %v1556_v38  ;;  %s1071_s17 = sld [smem:[#allocation2]] }
  0x45   : > { %892 = vmatpush.bf16.msra.mxu1 %v1261_v10  ;;  %v1651_v48 = vld [vmem:[#allocation5 + $0x264] sm:$0xf0]  ;;  %v1586_v49 = vld [vmem:[#allocation5 + $0x64] sm:$0xf]  ;;  %v1230_v50 = vld [vmem:[#allocation5 + $0x68] sm:$0xf0]  ;;  %v1305_v55 = vor.u32 %v1604_v40, %v1302_v43  ;;  %v1960_v58 = vpack.c.bf16 %v262_v45, %v262_v45 }
  0x46   : > { %880 = vmatpush.bf16.msra.mxu0 %v1189_v16  ;;  %v265_v53 = vld [vmem:[%s1944_s14 + $0x18] sm:$0xff]  ;;  %v263_v54 = vld [vmem:[%s1944_s14 + $0x8] sm:$0xff]  ;;  %v1485_v59 = vor.u32 %v1651_v48, %v1484_v44  ;;  %v1233_v60 = vor.u32 %v1586_v49, %v1230_v50  ;;  %v268_v33 = vld [vmem:[%s1944_s14 + $0x30] sm:$0xff]  ;;  %p257_p1 = scmp.lt.s32.totalorder %s1889_s26, 1  ;;  %vm1093_vm4 = vcmask 7168  }
  0x47   : > { %906 = vmatpush.bf16.msra.mxu2 %v1317_v20  ;;  %v1548_v56 = vld [vmem:[#allocation5 + $0x2e0] sm:$0xf]  ;;  %v1667_v57 = vld [vmem:[#allocation5 + $0x2e4] sm:$0xf0]  ;;  %v1602_v61 = vld [vmem:[#allocation5 + $0xe4] sm:$0xf]  ;;  %v1962_v3 = vpack.c.bf16 %v265_v53, %v265_v53  ;;  %v1964_v4 = vpack.c.bf16 %v263_v54, %v263_v54  ;;  %v1971_v43 = vpack.c.bf16 %v268_v33, %v268_v33 }
  0x48   : > { %919 = vmatpush.bf16.msra.mxu3 %v1381_v21  ;;  %v1294_v62 = vld [vmem:[#allocation5 + $0xe8] sm:$0xf0]  ;;  %v1476_v63 = vld [vmem:[#allocation5 + $0x250] sm:$0xf]  ;;  %v1649_v0 = vld [vmem:[#allocation5 + $0x254] sm:$0xf0]  ;;  %v1549_v5 = vor.u32 %v1667_v57, %v1548_v56 }
  0x49   : > { %893 = vmatpush.bf16.msra.mxu1 %v1253_v25  ;;  %v1584_v1 = vld [vmem:[#allocation5 + $0x54] sm:$0xf]  ;;  %v1222_v2 = vld [vmem:[#allocation5 + $0x58] sm:$0xf0]  ;;  %v1297_v6 = vor.u32 %v1602_v61, %v1294_v62  ;;  %v1540_v7 = vld [vmem:[#allocation5 + $0x2d0] sm:$0xf]  ;;  %v1477_v9 = vor.u32 %v1649_v0, %v1476_v63 }
  0x4a   : > { %881 = vmatpush.bf16.msra.mxu0 %v1181_v32  ;;  %v1665_v8 = vld [vmem:[#allocation5 + $0x2d4] sm:$0xf0]  ;;  %v1225_v10 = vor.u32 %v1584_v1, %v1222_v2  ;;  %v1600_v11 = vld [vmem:[#allocation5 + $0xd4] sm:$0xf]  ;;  %v1286_v12 = vld [vmem:[#allocation5 + $0xd8] sm:$0xf0] }
  0x4b   : > { %907 = vmatpush.bf16.msra.mxu2 %v1309_v36  ;;  %v1468_v13 = vld [vmem:[#allocation5 + $0x240] sm:$0xf]  ;;  %v1647_v14 = vld [vmem:[#allocation5 + $0x244] sm:$0xf0]  ;;  %v1582_v15 = vld [vmem:[#allocation5 + $0x44] sm:$0xf]  ;;  %v1541_v17 = vor.u32 %v1665_v8, %v1540_v7  ;;  %v1289_v18 = vor.u32 %v1600_v11, %v1286_v12 }
  0x4c   : > { %920 = vmatpush.bf16.msra.mxu3 %v1373_v37  ;;  %v1214_v16 = vld [vmem:[#allocation5 + $0x48] sm:$0xf0]  ;;  %v1532_v19 = vld [vmem:[#allocation5 + $0x2c0] sm:$0xf]  ;;  %v1663_v20 = vld [vmem:[#allocation5 + $0x2c4] sm:$0xf0]  ;;  %v1469_v21 = vor.u32 %v1647_v14, %v1468_v13 }
  0x4d   : > { %894 = vmatpush.bf16.msra.mxu1 %v1245_v46  ;;  %882 = vmatmul.bf16.vlgmr.msra.gmra.mxu0 %v1960_v58  ;;  %v1217_v22 = vor.u32 %v1582_v15, %v1214_v16  ;;  %v1598_v23 = vld [vmem:[#allocation5 + $0xc4] sm:$0xf]  ;;  %v1278_v24 = vld [vmem:[#allocation5 + $0xc8] sm:$0xf0]  ;;  %v1460_v25 = vld [vmem:[#allocation5 + $0x230] sm:$0xf]  ;;  %v1533_v29 = vor.u32 %v1663_v20, %v1532_v19 }
  0x4e   : > { %926 = vmatpush.bf16.msrb.mxu0 %v1493_v41  ;;  %908 = vmatmul.bf16.vlgmr.msra.gmra.mxu2 %v1956_v51  ;;  %v1645_v26 = vld [vmem:[#allocation5 + $0x234] sm:$0xf0]  ;;  %v1580_v27 = vld [vmem:[#allocation5 + $0x34] sm:$0xf]  ;;  %v1206_v28 = vld [vmem:[#allocation5 + $0x38] sm:$0xf0]  ;;  %v1281_v30 = vor.u32 %v1598_v23, %v1278_v24 }
  0x4f   : > { %959 = vmatpush.bf16.msrb.mxu2 %v1565_v47  ;;  %921 = vmatmul.bf16.vlgmr.msra.gmra.mxu3 %v1962_v3  ;;  %v1524_v31 = vld [vmem:[#allocation5 + $0x2b0] sm:$0xf]  ;;  %v1661_v32 = vld [vmem:[#allocation5 + $0x2b4] sm:$0xf0]  ;;  %v1461_v34 = vor.u32 %v1645_v26, %v1460_v25  ;;  %v1209_v35 = vor.u32 %v1580_v27, %v1206_v28  ;;  %v1596_v36 = vld [vmem:[#allocation5 + $0xb4] sm:$0xf] }
  0x50   : > { %965 = vmatpush.bf16.msrb.mxu3 %v1241_v42  ;;  %895 = vmatmul.bf16.vlgmr.msra.gmra.mxu1 %v1964_v4  ;;  %v1270_v37 = vld [vmem:[#allocation5 + $0xb8] sm:$0xf0]  ;;  %v1452_v38 = vld [vmem:[#allocation5 + $0x220] sm:$0xf]  ;;  %v1643_v39 = vld [vmem:[#allocation5 + $0x224] sm:$0xf0]  ;;  %v1525_v42 = vor.u32 %v1661_v32, %v1524_v31 }
  0x51   : > { %939 = vmatpush.bf16.msrb.mxu1 %v1557_v52  ;;  %v1578_v40 = vld [vmem:[#allocation5 + $0x24] sm:$0xf]  ;;  %v1198_v41 = vld [vmem:[#allocation5 + $0x28] sm:$0xf0]  ;;  %v1273_v44 = vor.u32 %v1596_v36, %v1270_v37  ;;  %v1516_v45 = vld [vmem:[#allocation5 + $0x2a0] sm:$0xf]  ;;  %v1453_v47 = vor.u32 %v1643_v39, %v1452_v38 }
  0x52   : > { %927 = vmatpush.bf16.msrb.mxu0 %v1485_v59  ;;  %v1659_v46 = vld [vmem:[#allocation5 + $0x2a4] sm:$0xf0]  ;;  %v1201_v48 = vor.u32 %v1578_v40, %v1198_v41  ;;  %v1594_v49 = vld [vmem:[#allocation5 + $0xa4] sm:$0xf]  ;;  %v1262_v50 = vld [vmem:[#allocation5 + $0xa8] sm:$0xf0] }
  0x53   : > { %978 = vmatpush.bf16.msra.mxu2 %v1305_v55  ;;  %v1444_v52 = vld [vmem:[#allocation5 + $0x210] sm:$0xf]  ;;  %v1641_v53 = vld [vmem:[#allocation5 + $0x214] sm:$0xf0]  ;;  %v1576_v54 = vld [vmem:[#allocation5 + $0x14] sm:$0xf]  ;;  %v1517_v56 = vor.u32 %v1659_v46, %v1516_v45  ;;  %v1265_v57 = vor.u32 %v1594_v49, %v1262_v50 }
  0x54   : > { %966 = vmatpush.bf16.msrb.mxu3 %v1233_v60  ;;  %v1190_v55 = vld [vmem:[#allocation5 + $0x18] sm:$0xf0]  ;;  %v1508_v59 = vld [vmem:[#allocation5 + $0x290] sm:$0xf]  ;;  %v1657_v60 = vld [vmem:[#allocation5 + $0x294] sm:$0xf0]  ;;  %v1445_v62 = vor.u32 %v1641_v53, %v1444_v52 }
  0x55   : > { %940 = vmatpush.bf16.msrb.mxu1 %v1549_v5  ;;  %v1592_v61 = vld [vmem:[#allocation5 + $0x94] sm:$0xf]  ;;  %v1193_v63 = vor.u32 %v1576_v54, %v1190_v55  ;;  %v1254_v0 = vld [vmem:[#allocation5 + $0x98] sm:$0xf0]  ;;  %v1436_v1 = vld [vmem:[#allocation5 + $0x200] sm:$0xf]  ;;  %v1509_v8 = vor.u32 %v1657_v60, %v1508_v59 }
  0x56   : > { %928 = vmatpush.bf16.msrb.mxu0 %v1477_v9  ;;  %v1639_v2 = vld [vmem:[#allocation5 + $0x204] sm:$0xf0]  ;;  %v1574_v5 = vld [vmem:[#allocation5 + $0x4] sm:$0xf]  ;;  %v1620_v7 = vld [vmem:[#allocation5 + $0x174] sm:$0xf]  ;;  %v1257_v12 = vor.u32 %v1592_v61, %v1254_v0 }
  0x57   : > { %979 = vmatpush.bf16.msra.mxu2 %v1297_v6  ;;  %v1182_v6 = vld [vmem:[#allocation5 + $0x8] sm:$0xf0]  ;;  %v1366_v9 = vld [vmem:[#allocation5 + $0x178] sm:$0xf0]  ;;  %v1500_v13 = vld [vmem:[#allocation5 + $0x280] sm:$0xf]  ;;  %v1437_v16 = vor.u32 %v1639_v2, %v1436_v1 }
  0x58   : > { %967 = vmatpush.bf16.msrb.mxu3 %v1225_v10  ;;  %v1652_v10 = vld [vmem:[#allocation5 + $0x274] sm:$0xf]  ;;  %v1494_v11 = vld [vmem:[#allocation5 + $0x278] sm:$0xf0]  ;;  %v1655_v14 = vld [vmem:[#allocation5 + $0x284] sm:$0xf0] }
  0x59   : > { %941 = vmatpush.bf16.msrb.mxu1 %v1541_v17  ;;  %v266_v15 = vld [vmem:[%s1944_s14 + $0x20] sm:$0xff]  ;;  %v1185_v17 = vor.u32 %v1574_v5, %v1182_v6  ;;  %v1430_v23 = vld [vmem:[#allocation5 + $0x1f8] sm:$0xf0]  ;;  %v1501_v26 = vor.u32 %v1655_v14, %v1500_v13  ;;  %v1618_v28 = vld [vmem:[#allocation5 + $0x164] sm:$0xf]  ;;  %s2029_s26 = smov (!%p257_p1, %s1889_s26), 1 }
  0x5a   : > { %929 = vmatpush.bf16.msrb.mxu0 %v1469_v21  ;;  %v1246_v19 = vld [vmem:[#allocation5 + $0x88] sm:$0xf0]  ;;  %v1636_v20 = vld [vmem:[#allocation5 + $0x1f4] sm:$0xf]  ;;  %v1369_v21 = vor.u32 %v1620_v7, %v1366_v9  ;;  %v1558_v25 = vld [vmem:[#allocation5 + $0x2f8] sm:$0xf0] }
  0x5b   : > { %980 = vmatpush.bf16.msra.mxu2 %v1289_v18  ;;  %v1590_v18 = vld [vmem:[#allocation5 + $0x84] sm:$0xf]  ;;  %v1668_v24 = vld [vmem:[#allocation5 + $0x2f4] sm:$0xf]  ;;  %v1486_v33 = vld [vmem:[#allocation5 + $0x268] sm:$0xf0] }
  0x5c   : > { %968 = vmatpush.bf16.msrb.mxu3 %v1217_v22  ;;  %v1497_v22 = vor.u32 %v1652_v10, %v1494_v11  ;;  %v267_v27 = vld [vmem:[%s1944_s14 + $0x28] sm:$0xff]  ;;  %v1249_v31 = vor.u32 %v1590_v18, %v1246_v19  ;;  %v1650_v32 = vld [vmem:[#allocation5 + $0x264] sm:$0xf]  ;;  %v1422_v39 = vld [vmem:[#allocation5 + $0x1e8] sm:$0xf0]  ;;  %s1177_s18 = sshll.u32 %s2029_s26, 3 }
  0x5d   : > { %942 = vmatpush.bf16.msrb.mxu1 %v1533_v29  ;;  %v1358_v29 = vld [vmem:[#allocation5 + $0x168] sm:$0xf0]  ;;  %v1634_v36 = vld [vmem:[#allocation5 + $0x1e4] sm:$0xf]  ;;  %v1979_v37 = vpack.c.bf16 %v267_v27, %v267_v27  ;;  %v1350_v45 = vld [vmem:[#allocation5 + $0x158] sm:$0xf0]  ;;  %s260_s4 = scalar_lea.vmem %s2020_s5, %s1177_s18 }
  0x5e   : > { %930 = vmatpush.bf16.msrb.mxu0 %v1461_v34  ;;  %1570 = vmatmul.msk.bf16.vlgmr.msrb.gmra.mxu2 %vm870_vm0, %v1971_v43  ;;  %v1433_v34 = vor.u32 %v1636_v20, %v1430_v23  ;;  %v1361_v38 = vor.u32 %v1618_v28, %v1358_v29  ;;  %v1666_v40 = vld [vmem:[#allocation5 + $0x2e4] sm:$0xf]  ;;  %v1550_v41 = vld [vmem:[#allocation5 + $0x2e8] sm:$0xf0]  ;;  %v1648_v46 = vld [vmem:[#allocation5 + $0x254] sm:$0xf] }
  0x5f   : > { %981 = vmatpush.bf16.msra.mxu2 %v1281_v30  ;;  %v1977_v30 = vpack.c.bf16 %v266_v15, %v266_v15  ;;  %v1553_v49 = vor.u32 %v1666_v40, %v1550_v41  ;;  %v1632_v50 = vld [vmem:[#allocation5 + $0x1d4] sm:$0xf]  ;;  %v1414_v53 = vld [vmem:[#allocation5 + $0x1d8] sm:$0xf0]  ;;  %v1342_v59 = vld [vmem:[#allocation5 + $0x148] sm:$0xf0] }
  0x60   : > { %969 = vmatpush.bf16.msrb.mxu3 %v1209_v35  ;;  %v1561_v35 = vor.u32 %v1668_v24, %v1558_v25  ;;  %v1664_v54 = vld [vmem:[#allocation5 + $0x2d4] sm:$0xf]  ;;  %v1542_v55 = vld [vmem:[#allocation5 + $0x2d8] sm:$0xf0]  ;;  %v1646_v60 = vld [vmem:[#allocation5 + $0x244] sm:$0xf] }
  0x61   : > { %943 = vmatpush.bf16.msrb.mxu1 %v1525_v42  ;;  %v1489_v42 = vor.u32 %v1650_v32, %v1486_v33  ;;  %v1470_v61 = vld [vmem:[#allocation5 + $0x248] sm:$0xf0]  ;;  %v1630_v0 = vld [vmem:[#allocation5 + $0x1c4] sm:$0xf]  ;;  %v1334_v9 = vld [vmem:[#allocation5 + $0x138] sm:$0xf0] }
  0x62   : > { %931 = vmatpush.bf16.msrb.mxu0 %v1453_v47  ;;  %v1478_v47 = vld [vmem:[#allocation5 + $0x258] sm:$0xf0]  ;;  %v1406_v2 = vld [vmem:[#allocation5 + $0x1c8] sm:$0xf0]  ;;  %v1662_v5 = vld [vmem:[#allocation5 + $0x2c4] sm:$0xf]  ;;  %v1473_v7 = vor.u32 %v1646_v60, %v1470_v61 }
  0x63   : > { %982 = vmatpush.bf16.msra.mxu2 %v1273_v44  ;;  %v1616_v44 = vld [vmem:[#allocation5 + $0x154] sm:$0xf]  ;;  %v1534_v6 = vld [vmem:[#allocation5 + $0x2c8] sm:$0xf0]  ;;  %v1409_v11 = vor.u32 %v1630_v0, %v1406_v2  ;;  %v1398_v14 = vld [vmem:[#allocation5 + $0x1b8] sm:$0xf0] }
  0x64   : > { %970 = vmatpush.bf16.msrb.mxu3 %v1201_v48  ;;  %v1425_v48 = vor.u32 %v1634_v36, %v1422_v39  ;;  %v1353_v52 = vor.u32 %v1616_v44, %v1350_v45  ;;  %v1644_v10 = vld [vmem:[#allocation5 + $0x234] sm:$0xf]  ;;  %v1610_v18 = vld [vmem:[#allocation5 + $0x124] sm:$0xf]  ;;  %v1326_v19 = vld [vmem:[#allocation5 + $0x128] sm:$0xf0] }
  0x65   : > { %944 = vmatpush.bf16.msrb.mxu1 %v1517_v56  ;;  %v1481_v56 = vor.u32 %v1648_v46, %v1478_v47  ;;  %v1660_v15 = vld [vmem:[#allocation5 + $0x2b4] sm:$0xf]  ;;  %v1642_v20 = vld [vmem:[#allocation5 + $0x224] sm:$0xf]  ;;  %v1329_v25 = vor.u32 %v1610_v18, %v1326_v19  ;;  %v1518_v28 = vld [vmem:[#allocation5 + $0x2a8] sm:$0xf0] }
  0x66   : > { %932 = vmatpush.bf16.msrb.mxu0 %v1445_v62  ;;  %v1417_v62 = vor.u32 %v1632_v50, %v1414_v53  ;;  %v1626_v24 = vld [vmem:[#allocation5 + $0x1a4] sm:$0xf]  ;;  %v1318_v32 = vld [vmem:[#allocation5 + $0x118] sm:$0xf0]  ;;  %v1640_v33 = vld [vmem:[#allocation5 + $0x214] sm:$0xf] }
  0x67   : > { %983 = vmatpush.bf16.msra.mxu2 %v1265_v57  ;;  %v1614_v57 = vld [vmem:[#allocation5 + $0x144] sm:$0xf]  ;;  %v1382_v40 = vld [vmem:[#allocation5 + $0x198] sm:$0xf0]  ;;  %v1656_v41 = vld [vmem:[#allocation5 + $0x294] sm:$0xf] }
  0x68   : > { %971 = vmatpush.bf16.msrb.mxu3 %v1193_v63  ;;  %v1545_v63 = vor.u32 %v1664_v54, %v1542_v55  ;;  %v1345_v1 = vor.u32 %v1614_v57, %v1342_v59  ;;  %v1658_v27 = vld [vmem:[#allocation5 + $0x2a4] sm:$0xf]  ;;  %v1310_v46 = vld [vmem:[#allocation5 + $0x108] sm:$0xf0] }
  0x69   : > { %945 = vmatpush.bf16.msrb.mxu1 %v1509_v8  ;;  %v1612_v8 = vld [vmem:[#allocation5 + $0x134] sm:$0xf]  ;;  %v1521_v36 = vor.u32 %v1658_v27, %v1518_v28  ;;  %v1606_v45 = vld [vmem:[#allocation5 + $0x104] sm:$0xf]  ;;  %v1566_v50 = vld [vmem:[#allocation5 + $0x308] sm:$0xf0] }
  0x6a   : > { %933 = vmatpush.bf16.msrb.mxu0 %v1437_v16  ;;  %v1337_v13 = vor.u32 %v1612_v8, %v1334_v9  ;;  %v1526_v16 = vld [vmem:[#allocation5 + $0x2b8] sm:$0xf0]  ;;  %v1638_v47 = vld [vmem:[#allocation5 + $0x204] sm:$0xf]  ;;  %v1313_v54 = vor.u32 %v1606_v45, %v1310_v46  ;;  %v1502_v60 = vld [vmem:[#allocation5 + $0x288] sm:$0xf0] }
  0x6b   : > { %984 = vmatpush.bf16.msra.mxu2 %v1257_v12  ;;  %v1628_v12 = vld [vmem:[#allocation5 + $0x1b4] sm:$0xf]  ;;  %v1529_v23 = vor.u32 %v1660_v15, %v1526_v16  ;;  %v1622_v55 = vld [vmem:[#allocation5 + $0x184] sm:$0xf] }
  0x6c   : > { %972 = vmatpush.bf16.msrb.mxu3 %v1185_v17  ;;  %v1654_v59 = vld [vmem:[#allocation5 + $0x284] sm:$0xf] }
  0x6d   : > { %946 = vmatpush.bf16.msrb.mxu1 %v1501_v26  ;;  %934 = vmatmul.bf16.vlgmr.msrb.gmra.mxu0 %v1977_v30  ;;  %v1390_v26 = vld [vmem:[#allocation5 + $0x1a8] sm:$0xf0] }
  0x6e   : > { %991 = vmatpush.bf16.msra.mxu0 %v1369_v21  ;;  %v1454_v21 = vld [vmem:[#allocation5 + $0x228] sm:$0xf0] }
  0x6f   : > { %985 = vmatpush.bf16.msra.mxu2 %v1249_v31  ;;  %973 = vmatmul.bf16.vlgmr.msrb.gmra.mxu3 %v1960_v58  ;;  %v1537_v58 = vor.u32 %v1662_v5, %v1534_v6  ;;  %v1457_v29 = vor.u32 %v1642_v20, %v1454_v21  ;;  %v1608_v31 = vld [vmem:[#allocation5 + $0x114] sm:$0xf] }
  0x70   : > { %1017 = vmatpush.bf16.msra.mxu3 %v1497_v22  ;;  %947 = vmatmul.bf16.vlgmr.msrb.gmra.mxu1 %v1979_v37  ;;  %v1401_v22 = vor.u32 %v1628_v12, %v1398_v14  ;;  %v1321_v39 = vor.u32 %v1608_v31, %v1318_v32 }
  0x71   : > { %1004 = vmatpush.bf16.msra.mxu1 %v1433_v34  ;;  %v1446_v34 = vld [vmem:[#allocation5 + $0x218] sm:$0xf0] }
  0x72   : > { %992 = vmatpush.bf16.msra.mxu0 %v1361_v38  ;;  %986 = vmatmul.bf16.vlgmr.msra.gmra.mxu2 %v1964_v4  ;;  %v1462_v4 = vld [vmem:[#allocation5 + $0x238] sm:$0xf0]  ;;  %v1624_v38 = vld [vmem:[#allocation5 + $0x194] sm:$0xf]  ;;  %v1449_v44 = vor.u32 %v1640_v33, %v1446_v34 }
  0x73   : > { %1030 = vmatpush.bf16.msrb.mxu2 %v1561_v35  ;;  %v1465_v17 = vor.u32 %v1644_v10, %v1462_v4  ;;  %v1393_v35 = vor.u32 %v1626_v24, %v1390_v26 }
  0x74   : > { %1018 = vmatpush.bf16.msra.mxu3 %v1489_v42  ;;  %v1510_v42 = vld [vmem:[#allocation5 + $0x298] sm:$0xf0] }
  0x75   : > { %1005 = vmatpush.bf16.msra.mxu1 %v1425_v48  ;;  %v1438_v48 = vld [vmem:[#allocation5 + $0x208] sm:$0xf0]  ;;  %v1513_v53 = vor.u32 %v1656_v41, %v1510_v42 }
  0x76   : > { %993 = vmatpush.bf16.msra.mxu0 %v1353_v52  ;;  %v1385_v52 = vor.u32 %v1624_v38, %v1382_v40  ;;  %v1441_v57 = vor.u32 %v1638_v47, %v1438_v48  ;;  %v1060_v40 = vld [vmem:[%s2018_s3] sm:$0x3] }
  0x77   : > { %1031 = vmatpush.bf16.msrb.mxu2 %v1553_v49  ;;  %v1670_v49 = vld [vmem:[#allocation5 + $0x304] sm:$0xf]  ;;  %v1062_v46 = vperm.slane %v1060_v40, 0  ;;  %v1063_v47 = vperm.slane %v1060_v40, 1 }
  0x78   : > { %1019 = vmatpush.bf16.msra.mxu3 %v1481_v56  ;;  %v1374_v56 = vld [vmem:[#allocation5 + $0x188] sm:$0xf0]  ;;  %v1569_v61 = vor.u32 %v1670_v49, %v1566_v50 }
  0x79   : > { %1006 = vmatpush.bf16.msra.mxu1 %v1417_v62  ;;  %v1377_v62 = vor.u32 %v1622_v55, %v1374_v56 }
  0x7a   : > { %994 = vmatpush.bf16.msra.mxu0 %v1345_v1 }
  0x7b   : > { %1032 = vmatpush.bf16.msrb.mxu2 %v1545_v63  ;;  %v1505_v63 = vor.u32 %v1654_v59, %v1502_v60 }
  0x7c   : > { %1020 = vmatpush.bf16.msra.mxu3 %v1473_v7 }
  0x7d   : > { %1007 = vmatpush.bf16.msra.mxu1 %v1409_v11 }
  0x7e   : > { %995 = vmatpush.bf16.msra.mxu0 %v1337_v13 }
  0x7f   : > { %1033 = vmatpush.bf16.msrb.mxu2 %v1537_v58 }
  0x80   : > { %1021 = vmatpush.bf16.msra.mxu3 %v1465_v17 }
  0x81   : > { %1008 = vmatpush.bf16.msra.mxu1 %v1401_v22 }
  0x82   : > { %996 = vmatpush.bf16.msra.mxu0 %v1329_v25 }
  0x83   : > { %1034 = vmatpush.bf16.msrb.mxu2 %v1529_v23 }
  0x84   : > { %1022 = vmatpush.bf16.msra.mxu3 %v1457_v29 }
  0x85   : > { %1009 = vmatpush.bf16.msra.mxu1 %v1393_v35 }
  0x86   : > { %997 = vmatpush.bf16.msra.mxu0 %v1321_v39 }
  0x87   : > { %1035 = vmatpush.bf16.msrb.mxu2 %v1521_v36 }
  0x88   : > { %1023 = vmatpush.bf16.msra.mxu3 %v1449_v44 }
  0x89   : > { %1010 = vmatpush.bf16.msra.mxu1 %v1385_v52 }
  0x8a   : > { %998 = vmatpush.bf16.msra.mxu0 %v1313_v54  ;;  %v1072_v54 = vstv %s1071_s17 }
  0x8b   : > { %1036 = vmatpush.bf16.msrb.mxu2 %v1513_v53 }
  0x8c   : > { %1024 = vmatpush.bf16.msra.mxu3 %v1441_v57 }
  0x8d   : > { %1011 = vmatpush.bf16.msra.mxu1 %v1377_v62  ;;  %999 = vmatmul.bf16.vlgmr.msra.gmra.mxu0 %v1956_v51 }
  0x8e   : > { %1050 = vmatpush.bf16.msrb.mxu0 %v1569_v61 }
  0x8f   : > { %1025 = vmatmul.bf16.vlgmr.msra.gmra.mxu3 %v1977_v30  ;;  %1037 = vmatpush.bf16.msrb.mxu2 %v1505_v63 }
  0x90   : > { %1012 = vmatmul.bf16.vlgmr.msra.gmra.mxu1 %v1962_v3 }
  0x92   : > { %1038 = vmatmul.bf16.vlgmr.msrb.gmra.mxu2 %v1979_v37 }
  0x9d   : > { %1571 = vmatmul.msk.bf16.vlgmr.msrb.gmra.mxu0 %vm870_vm0, %v1971_v43  ;;  %v374_v43 = vld [vmem:[%s2017_s2] sm:$0x3] }
  0x9e   : > { %v376_v37 = vperm.slane %v374_v43, 0  ;;  %v377_v17 = vperm.slane %v374_v43, 1 }
  0xca   : > { %v883_v0 = vpop.f32.mrf.mxu0 }
  0xcb   : > { %v884_v14 = vadd.f32 %v883_v0, %v376_v37 }
  0xcd   : > { %v896_v1 = vpop.f32.mrf.mxu1 }
  0xce   : > { %v897_v16 = vadd.f32 %v896_v1, %v884_v14 }
  0xd1   : > { %v909_v2 = vpop.f32.mrf.mxu2 }
  0xd2   : > { %v922_v5 = vpop.f32.mrf.mxu3  ;;  %v885_v6 = vpop.f32.mrf.mxu0  ;;  %v910_v18 = vadd.f32 %v909_v2, %v897_v16 }
  0xd4   : > { %v923_v21 = vadd.f32 %v922_v5, %v910_v18 }
  0xd5   : > { %v898_v7 = vpop.f32.mrf.mxu1 }
  0xd9   : > { %v911_v8 = vpop.f32.mrf.mxu2 }
  0xda   : > { %v924_v9 = vpop.f32.mrf.mxu3 }
  0xe1   : > { %v961_v10 = vpop.f32.mrf.mxu2 }
  0xe9   : > { %v963_v4 = vpop.f32.mrf.mxu2 }
  0xea   : > { %v935_v51 = vpop.f32.mrf.mxu0 }
  0xeb   : > { %v936_v23 = vadd.f32 %v935_v51, %v923_v21 }
  0xed   : > { %v948_v30 = vpop.f32.mrf.mxu1 }
  0xee   : > { %v949_v26 = vadd.f32 %v948_v30, %v936_v23 }
  0xf0   : > { %v962_v32 = vadd.f32 %v961_v10, %v949_v26 }
  0xf2   : > { %v937_v11 = vpop.f32.mrf.mxu0  ;;  %v974_v3 = vpop.f32.mrf.mxu3  ;;  %v1056_v35 = vmul.f32 0.2, %v962_v32 }
  0xf3   : > { %v975_v19 = vadd.f32 %v974_v3, %v377_v17 }
  0xf4   : > { %v1058_v44 = vmax.f32 %v962_v32, %v1056_v35 }
  0xf5   : > { %v987_v58 = vpop.f32.mrf.mxu2  ;;  %v950_v12 = vpop.f32.mrf.mxu1 }
  0xf6   : > { %v988_v22 = vadd.f32 %v987_v58, %v975_v19  ;;  %v1066_v49 = vmul.f32 %v1062_v46, %v1058_v44 }
  0xfa   : > { %v976_v15 = vpop.f32.mrf.mxu3 }
  0xfd   : > { %v989_v13 = vpop.f32.mrf.mxu2 }
 0x10a   : > { %v1000_v20 = vpop.f32.mrf.mxu0 }
 0x10b   : > { %v1001_v25 = vadd.f32 %v1000_v20, %v988_v22 }
 0x10d   : > { %v1013_v24 = vpop.f32.mrf.mxu1 }
 0x10e   : > { %v1014_v29 = vadd.f32 %v1013_v24, %v1001_v25 }
 0x112   : > { %v1026_v27 = vpop.f32.mrf.mxu3  ;;  %v1002_v28 = vpop.f32.mrf.mxu0 }
 0x113   : > { %v1027_v33 = vadd.f32 %v1026_v27, %v1014_v29 }
 0x115   : > { %v1039_v31 = vpop.f32.mrf.mxu2  ;;  %v1015_v34 = vpop.f32.mrf.mxu1 }
 0x116   : > { %v1040_v36 = vadd.f32 %v1039_v31, %v1027_v33 }
 0x11a   : > { %v1028_v38 = vpop.f32.mrf.mxu3  ;;  %v1052_v39 = vpop.f32.mrf.mxu0 }
 0x11b   : > { %v1053_v41 = vadd.f32 %v1052_v39, %v1040_v36 }
 0x11d   : > { %v1041_v42 = vpop.f32.mrf.mxu2  ;;  %v1057_v45 = vmul.f32 0.2, %v1053_v41 }
 0x11f   : > { %v1059_v48 = vmax.f32 %v1053_v41, %v1057_v45 }
 0x121   : > { %v1067_v50 = vmul.f32 %v1063_v47, %v1059_v48 }
 0x122   : > { %v1054_v52 = vpop.f32.mrf.mxu0 }
 0x123   : > { %v1068_v53 = vadd.f32 %v1067_v50, %v1066_v49 }
 0x125   : > { %1069 = vadd.xlane.f32.xlu0 %v1068_v53 }
 0x198   : > { %v1070_v55 = vpop.xlane.xlu0 %1069 }
 0x199   : > { %v1073_v56 = vadd.f32 %v1072_v54, %v1070_v55 }
 0x19b   : > { %v1074_v57 = vsub.f32 0.0, %v1073_v56 }
 0x19d   : > { %v1075_v59 = vmul.f32 1.442695, %v1074_v57 }
 0x19f   : > { %1727 = vpow2.f32 %v1075_v59 }
 0x1a5   : > { %v1728_v60 = vpop.eup %1727 }
 0x1a6   : > { %v1077_v61 = vadd.f32 1.0, %v1728_v60 }
 0x1a8   : > { %1729 = vrcp.f32 %v1077_v61  ;;  %v1089_v1 = vand.u32 2147483648, %v1077_v61  ;;  %v1087_v5 = vand.u32 2147483647, %v1077_v61  ;;  %vm1083_vm2 = vweird.f32 %v1077_v61 }
 0x1aa   : > { %v1090_v7 = vor.u32 1.1754944e-38, %v1089_v1  ;;  %vm1088_vm5 = vcmp.eq.f32.partialorder %v1087_v5, 8.507059e+37 }
 0x1ae   : > { %v1730_v62 = vpop.eup %1729 }
 0x1af   : > { %v1079_v63 = vmul.f32 %v1730_v62, %v1077_v61  ;;  %vm1084_vm1 = vweird.f32 %v1730_v62 }
 0x1b0   : > { %vm1085_vm3 = vmor %vm1083_vm2, %vm1084_vm1 }
 0x1b1   : > { %v1080_v0 = vsub.f32 1.0, %v1079_v63 }
 0x1b3   : > { %v1081_v2 = vmul.f32 %v1730_v62, %v1080_v0 }
 0x1b5   : > { %v1082_v6 = vadd.f32 %v1730_v62, %v1081_v2 }
 0x1b7   : > { %v1086_v8 = vsel %vm1085_vm3, %v1730_v62, %v1082_v6 }
 0x1b8   : > { %v1091_v9 = vsel %vm1088_vm5, %v1090_v7, %v1086_v8 }
 0x1b9   : > { %1094 = vst.msk [vmem:[%s260_s4] sm:$0xff] %vm1093_vm4, %v1091_v9 }
 0x1ba PF: > { %p17_p3 = scmp.ge.s32.totalorder %s1903_s7, 4   ;;  %s2024_s20 = smov %s1821_s21 }
 0x1bb   : > { %s2025_s21 = smov %s1825_s22  ;;  %s2026_s22 = smov %s1913_s10 }
 0x1bc   : > { %s2027_s23 = smov %s1903_s7  ;;  %19 = sbr.rel (!%p17_p3) target bundleno = 6 (0x6), region = 84 }
 0x1c1   :  { %1114 = vsyncpa [#allocation4], 1 }
 0x1c2   :  { %1116 = vsyncpa [#allocation4 + $0x1], 1 }
 0x1c3   :  { %1117 = vsyncpa [#allocation6], 1 }

</bundles_post_ra>
